<compile_context>
chip_gen: v6e
topology: v6e:2x2x1
jax: 0.10.0
libtpu: 0.0.40
codegen_flags: <defaults>
</compile_context>

<pallas_src>
import functools

import jax
import jax.numpy as jnp
from jax import lax
from jax.experimental import pallas as pl
from jax.experimental.pallas import tpu as pltpu

STATE_DIM = 8      # LunarLander-v2 observation dim
ACTION_DIM = 4     # LunarLander-v2 action dim
HIDDEN = 128
HEAD_W = 8         # fused head width: [policy(4) | value(1) | pad(3)]
MAX_TILE_B = 2048  # batch rows per grid step for large rollouts


def _round_up(x, m):
    return (x + m - 1) // m * m


def _detect_num_tensorcores():
    """v7x has 2 TensorCores/chip; v5e/v6e have 1. Best-effort, never fatal."""
    try:
        kind = jax.devices()[0].device_kind.lower()
        return 2 if "v7" in kind else 1
    except Exception:  # pragma: no cover - defensive
        return 1


_NUM_TC = _detect_num_tensorcores()


def _actor_critic_kernel(x_ref, w1_ref, b1_ref, wh_ref, bh_ref,
                         pol_ref, val_ref, *, action_dim):
    """Fused forward pass for one batch tile.

    x_ref   : [TB, S]       f32
    w1_ref  : [S, H]        f32   shared Linear, already [in, out]
    b1_ref  : [1, H]        f32
    wh_ref  : [H, HEAD_W]   f32   fused heads: [wp.T | wv.T | 0-pad]
    bh_ref  : [1, HEAD_W]   f32   fused bias:  [bp   | bv   | 0-pad]
    pol_ref : [TB, A]       f32   softmax policy probabilities
    val_ref : [TB, 1]       f32   state value
    """
    x = x_ref[...]

    # shared: Linear + ReLU (single MXU pass, f32 accumulation)
    h = jnp.dot(x, w1_ref[...], preferred_element_type=jnp.float32) + b1_ref[...]
    h = jnp.maximum(h, 0.0)

    # fused heads: one narrow MXU pass -> [TB, HEAD_W]
    z = jnp.dot(h, wh_ref[...], preferred_element_type=jnp.float32) + bh_ref[...]

    # column-role mask from a single (1, HEAD_W) vreg; broadcasts for free
    col = lax.broadcasted_iota(jnp.int32, (1, HEAD_W), dimension=1)
    is_pol = col < action_dim

    # numerically-stable softmax restricted to the policy columns
    logits = jnp.where(is_pol, z, -jnp.inf)
    m = jnp.max(logits, axis=-1, keepdims=True)
    e = jnp.exp(logits - m)                        # exactly 0 outside policy cols
    denom = jnp.sum(e, axis=-1, keepdims=True)
    probs = e * pl.reciprocal(denom, approx=False)

    pol_ref[...] = probs[:, :action_dim]
    val_ref[...] = z[:, action_dim:action_dim + 1]


def prepare_params(params):
    """One-time layout prep. Call OUTSIDE the hot path (not per forward)."""
    w1, b1, wp, bp, wv, bv = params
    H, S = w1.shape
    A = wp.shape[0]

    w1_t = jnp.asarray(w1.T, jnp.float32)                  # [S, H]
    b1_r = jnp.asarray(b1, jnp.float32).reshape(1, H)      # [1, H]

    # Fused head weight [H, HEAD_W] = [ wp.T | wv.T | zeros ]
    wh = jnp.zeros((H, HEAD_W), jnp.float32)
    wh = wh.at[:, :A].set(wp.T).at[:, A:A + 1].set(wv.T)

    # Fused head bias [1, HEAD_W] = [ bp | bv | zeros ]
    bh = jnp.zeros((1, HEAD_W), jnp.float32)
    bh = bh.at[0, :A].set(bp).at[0, A].set(bv[0])

    return (w1_t, b1_r, wh, bh)


@jax.jit
def actor_critic_forward(x, prepared):
    """x: [B, S] f32. Returns (policy [B, A], value [B, 1])."""
    w1_t, b1_r, wh, bh = prepared
    B, S = x.shape
    H = w1_t.shape[1]
    N = wh.shape[1]
    A = ACTION_DIM

    # Biggest tile that fits comfortably -> fewest ~0.35us grid steps.
    tile_b = min(_round_up(B, 8), MAX_TILE_B)
    # v7x: guarantee >= 2 balanced steps so both TensorCores get work.
    if _NUM_TC > 1 and B > 256:
        tile_b = min(tile_b, _round_up(pl.cdiv(B, _NUM_TC), 8))
    grid = (pl.cdiv(B, tile_b),)

    policy, value = pl.pallas_call(
        functools.partial(_actor_critic_kernel, action_dim=A),
        out_shape=(
            jax.ShapeDtypeStruct((B, A), jnp.float32),
            jax.ShapeDtypeStruct((B, 1), jnp.float32),
        ),
        grid_spec=pltpu.PrefetchScalarGridSpec(
            num_scalar_prefetch=0,
            grid=grid,
            in_specs=[
                # x tiled over batch; weights/biases stay resident across steps
                pl.BlockSpec((tile_b, S), lambda i: (i, 0)),
                pl.BlockSpec((S, H), lambda i: (0, 0)),
                pl.BlockSpec((1, H), lambda i: (0, 0)),
                pl.BlockSpec((H, N), lambda i: (0, 0)),
                pl.BlockSpec((1, N), lambda i: (0, 0)),
            ],
            out_specs=[
                pl.BlockSpec((tile_b, A), lambda i: (i, 0)),
                pl.BlockSpec((tile_b, 1), lambda i: (i, 0)),
            ],
        ),
        compiler_params=pltpu.CompilerParams(
            dimension_semantics=("parallel",),   # v7x: shard batch across 2 TCs
        ),
    )(x, w1_t, b1_r, wh, bh)

    return policy, value


def init_params(key, state_dim, action_dim, hidden):
    """Deterministic init mimicking nn.Linear default (uniform +/- 1/sqrt(fan_in))."""
    ks = jax.random.split(key, 6)

    def lin(kw, kb, out_f, in_f):
        bound = 1.0 / jnp.sqrt(jnp.float32(in_f))
        w = jax.random.uniform(kw, (out_f, in_f), jnp.float32, -bound, bound)
        b = jax.random.uniform(kb, (out_f,), jnp.float32, -bound, bound)
        return w, b

    w1, b1 = lin(ks[0], ks[1], hidden, state_dim)       # shared Linear
    wp, bp = lin(ks[2], ks[3], action_dim, hidden)      # policy Linear
    wv, bv = lin(ks[4], ks[5], 1, hidden)               # value Linear
    return (w1, b1, wp, bp, wv, bv)


def reference_forward(x, params):
    """Pure-JAX reference for correctness check."""
    w1, b1, wp, bp, wv, bv = params
    h = jnp.maximum(x @ w1.T + b1, 0.0)
    logits = h @ wp.T + bp
    policy = jax.nn.softmax(logits, axis=-1)
    value = h @ wv.T + bv
    return policy, value


if __name__ == "__main__":
    key = jax.random.PRNGKey(0)
    k_param, k_x = jax.random.split(key)

    params = init_params(k_param, STATE_DIM, ACTION_DIM, HIDDEN)
    prepared = prepare_params(params)   # one-time layout prep, outside hot path

    batch = 8
    x = jax.random.normal(k_x, (batch, STATE_DIM), jnp.float32)

    policy, value = actor_critic_forward(x, prepared)
    jax.block_until_ready((policy, value))

    ref_policy, ref_value = reference_forward(x, params)
    assert policy.shape == (batch, ACTION_DIM)
    assert value.shape == (batch, 1)
    assert jnp.allclose(policy, ref_policy, atol=1e-5, rtol=1e-5)
    assert jnp.allclose(value, ref_value, atol=1e-5, rtol=1e-5)
    assert jnp.allclose(jnp.sum(policy, axis=-1), 1.0, atol=1e-5)

    print("KERNEL_OK")
</pallas_src>

<mosaic_0001>
module attributes {stable_mosaic.version = 11 : i64} {
  func.func @_actor_critic_kernel(%arg0: i32, %arg1: memref<8x8xf32, #tpu.memory_space<vmem>>, %arg2: memref<8x128xf32, #tpu.memory_space<vmem>>, %arg3: memref<1x128xf32, #tpu.memory_space<vmem>>, %arg4: memref<128x8xf32, #tpu.memory_space<vmem>>, %arg5: memref<1x8xf32, #tpu.memory_space<vmem>>, %arg6: memref<8x4xf32, #tpu.memory_space<vmem>>, %arg7: memref<8x1xf32, #tpu.memory_space<vmem>>) attributes {dimension_semantics = [#tpu.dimension_semantics<parallel>], iteration_bounds = array<i64: 1>, scalar_prefetch = 0 : i64, scratch_operands = 0 : i64, tpu.core_type = #tpu.core_type<tc>, window_params = [{transform_indices = @transform_0, window_bounds = array<i64: 8, 8>}, {pipeline_mode = #tpu.pipeline_mode<synchronous>, transform_indices = @transform_1, window_bounds = array<i64: 8, 128>}, {pipeline_mode = #tpu.pipeline_mode<synchronous>, transform_indices = @transform_2, window_bounds = array<i64: 1, 128>}, {pipeline_mode = #tpu.pipeline_mode<synchronous>, transform_indices = @transform_3, window_bounds = array<i64: 128, 8>}, {pipeline_mode = #tpu.pipeline_mode<synchronous>, transform_indices = @transform_4, window_bounds = array<i64: 1, 8>}, {transform_indices = @transform_5, window_bounds = array<i64: 8, 4>}, {transform_indices = @transform_6, window_bounds = array<i64: 8, 1>}]} {
    %c0 = arith.constant 0 : index
    %c0_0 = arith.constant 0 : index
    %0 = vector.load %arg1[%c0, %c0_0] : memref<8x8xf32, #tpu.memory_space<vmem>>, vector<8x8xf32>
    %c0_1 = arith.constant 0 : index
    %c0_2 = arith.constant 0 : index
    %1 = vector.load %arg2[%c0_1, %c0_2] : memref<8x128xf32, #tpu.memory_space<vmem>>, vector<8x128xf32>
    %cst = arith.constant dense<0.000000e+00> : vector<8x128xf32>
    %2 = tpu.matmul %0, %1, %cst {dimension_numbers = #tpu.dot_dimension_numbers<[1], [0], [0], [1], [0, 0, 1, 1], [], []>} : vector<8x8xf32>, vector<8x128xf32>, vector<8x128xf32> -> vector<8x128xf32>
    %c0_3 = arith.constant 0 : index
    %c0_4 = arith.constant 0 : index
    %3 = vector.load %arg3[%c0_3, %c0_4] : memref<1x128xf32, #tpu.memory_space<vmem>>, vector<1x128xf32>
    %4 = vector.broadcast %3 : vector<1x128xf32> to vector<8x128xf32>
    %5 = arith.addf %2, %4 : vector<8x128xf32>
    %cst_5 = arith.constant 0.000000e+00 : f32
    %6 = vector.broadcast %cst_5 : f32 to vector<8x128xf32>
    %7 = arith.maximumf %5, %6 : vector<8x128xf32>
    %c0_6 = arith.constant 0 : index
    %c0_7 = arith.constant 0 : index
    %8 = vector.load %arg4[%c0_6, %c0_7] : memref<128x8xf32, #tpu.memory_space<vmem>>, vector<128x8xf32>
    %cst_8 = arith.constant dense<0.000000e+00> : vector<8x8xf32>
    %9 = tpu.matmul %7, %8, %cst_8 {dimension_numbers = #tpu.dot_dimension_numbers<[1], [0], [0], [1], [0, 0, 1, 1], [], []>} : vector<8x128xf32>, vector<128x8xf32>, vector<8x8xf32> -> vector<8x8xf32>
    %c0_9 = arith.constant 0 : index
    %c0_10 = arith.constant 0 : index
    %10 = vector.load %arg5[%c0_9, %c0_10] : memref<1x8xf32, #tpu.memory_space<vmem>>, vector<1x8xf32>
    %11 = vector.broadcast %10 : vector<1x8xf32> to vector<8x8xf32>
    %12 = arith.addf %9, %11 : vector<8x8xf32>
    %13 = tpu.iota {dimensions = array<i32: 1>} : vector<1x8xi32>
    %c4_i32 = arith.constant 4 : i32
    %14 = vector.broadcast %c4_i32 : i32 to vector<1x8xi32>
    %15 = arith.cmpi slt, %13, %14 : vector<1x8xi32>
    %cst_11 = arith.constant 0xFF800000 : f32
    %16 = vector.shape_cast %15 : vector<1x8xi1> to vector<1x8xi1>
    %17 = vector.broadcast %16 : vector<1x8xi1> to vector<8x8xi1>
    %18 = vector.broadcast %cst_11 : f32 to vector<8x8xf32>
    %19 = arith.select %17, %12, %18 : vector<8x8xi1>, vector<8x8xf32>
    %cst_12 = arith.constant dense<0xFF800000> : vector<8xf32>
    %20 = vector.multi_reduction <maximumf>, %19, %cst_12 [1] : vector<8x8xf32> to vector<8xf32>
    %21 = vector.shape_cast %20 : vector<8xf32> to vector<8x1xf32>
    %22 = vector.broadcast %21 : vector<8x1xf32> to vector<8x8xf32>
    %23 = arith.subf %19, %22 : vector<8x8xf32>
    %24 = math.exp %23 : vector<8x8xf32>
    %cst_13 = arith.constant dense<0.000000e+00> : vector<8xf32>
    %25 = vector.multi_reduction <add>, %24, %cst_13 [1] : vector<8x8xf32> to vector<8xf32>
    %26 = vector.shape_cast %25 : vector<8xf32> to vector<8x1xf32>
    %27 = tpu.reciprocal %26 : vector<8x1xf32> -> vector<8x1xf32>
    %28 = vector.broadcast %27 : vector<8x1xf32> to vector<8x8xf32>
    %29 = arith.mulf %24, %28 : vector<8x8xf32>
    %30 = vector.extract_strided_slice %29 {offsets = [0, 0], sizes = [8, 4], strides = [1, 1]} : vector<8x8xf32> to vector<8x4xf32>
    %c0_14 = arith.constant 0 : index
    %c0_15 = arith.constant 0 : index
    %31 = vector.load %arg6[%c0_14, %c0_15] : memref<8x4xf32, #tpu.memory_space<vmem>>, vector<8x4xf32>
    tpu.vector_store %arg6[%c0_14, %c0_15], %30 {strides = array<i32>} : memref<8x4xf32, #tpu.memory_space<vmem>>, vector<8x4xf32>,
    %32 = vector.extract_strided_slice %12 {offsets = [0, 4], sizes = [8, 1], strides = [1, 1]} : vector<8x8xf32> to vector<8x1xf32>
    %c0_16 = arith.constant 0 : index
    %c0_17 = arith.constant 0 : index
    %33 = vector.load %arg7[%c0_16, %c0_17] : memref<8x1xf32, #tpu.memory_space<vmem>>, vector<8x1xf32>
    tpu.vector_store %arg7[%c0_16, %c0_17], %32 {strides = array<i32>} : memref<8x1xf32, #tpu.memory_space<vmem>>, vector<8x1xf32>,
    return
  }
  func.func @transform_0(%arg0: i32) -> (i32, i32) {
    %c0_i32 = arith.constant 0 : i32
    %c0_i32_0 = arith.constant 0 : i32
    return %arg0, %c0_i32 : i32, i32
  }
  func.func @transform_1(%arg0: i32) -> (i32, i32) {
    %c0_i32 = arith.constant 0 : i32
    %c0_i32_0 = arith.constant 0 : i32
    %c0_i32_1 = arith.constant 0 : i32
    return %c0_i32, %c0_i32_0 : i32, i32
  }
  func.func @transform_2(%arg0: i32) -> (i32, i32) {
    %c0_i32 = arith.constant 0 : i32
    %c0_i32_0 = arith.constant 0 : i32
    %c0_i32_1 = arith.constant 0 : i32
    return %c0_i32, %c0_i32_0 : i32, i32
  }
  func.func @transform_3(%arg0: i32) -> (i32, i32) {
    %c0_i32 = arith.constant 0 : i32
    %c0_i32_0 = arith.constant 0 : i32
    %c0_i32_1 = arith.constant 0 : i32
    return %c0_i32, %c0_i32_0 : i32, i32
  }
  func.func @transform_4(%arg0: i32) -> (i32, i32) {
    %c0_i32 = arith.constant 0 : i32
    %c0_i32_0 = arith.constant 0 : i32
    %c0_i32_1 = arith.constant 0 : i32
    return %c0_i32, %c0_i32_0 : i32, i32
  }
  func.func @transform_5(%arg0: i32) -> (i32, i32) {
    %c0_i32 = arith.constant 0 : i32
    %c0_i32_0 = arith.constant 0 : i32
    return %arg0, %c0_i32 : i32, i32
  }
  func.func @transform_6(%arg0: i32) -> (i32, i32) {
    %c0_i32 = arith.constant 0 : i32
    %c0_i32_0 = arith.constant 0 : i32
    return %arg0, %c0_i32 : i32, i32
  }
}

</mosaic_0001>

<bundles_post_ra>
// kernel: actor_critic_forward.1
= control target key start
LH: loop header
LB: loop body
LE: loop exit
PB: predicated region body
PF: predicated region fallthrough
CT: control target
= control target key end

     0   :  { %vm31_vm0 = vcmask 64512   ;;  %v301_v0 = vmov 0.0   ;;  %vm302_vm1 = vmmov 0   ;;  %v199_v24 = vlaneseq  ;;  %s408_s1 = inlined_call_operand.vmem [shape: f32[8,128], index: 1, kind: input, shape index: {}]   ;;  %s409_s0 = inlined_call_operand.vmem [shape: f32[8,8], index: 0, kind: input, shape index: {}]   ;;  %s410_s3 = inlined_call_operand.vmem [shape: f32[128,8], index: 3, kind: input, shape index: {}]   ;;  %s411_s2 = inlined_call_operand.vmem [shape: f32[1,128], index: 2, kind: input, shape index: {}]   ;;  %s412_s4 = inlined_call_operand.vmem [shape: f32[1,8], index: 4, kind: input, shape index: {}]   ;;  %s413_s6 = inlined_call_operand.vmem [shape: f32[8,1], index: 6, kind: output, shape index: {1}]   ;;  %s414_s5 = inlined_call_operand.vmem [shape: f32[8,4], index: 5, kind: output, shape index: {0}]  }
   0x1   :  { %254 = vmatprep.subr.mxu0 %v301_v0  ;;  %v23_v1 = vld [vmem:[%s408_s1] sm:$0xff]  ;;  %256 = vmatprep.mubr.msk.f32.mxu0 %vm302_vm1, %v301_v0  ;;  %v121_v3 = vld [vmem:[%s410_s3 + $0x78] sm:$0xff]  ;;  %v120_v4 = vld [vmem:[%s410_s3 + $0x70] sm:$0xff]  ;;  %vm222_vm3 = vcmask 7168   ;;  %vm216_vm4 = vcmask 31744  }
   0x2   :  { %v22_v2 = vld [vmem:[%s409_s0] sm:$0xff]  ;;  %255 = vmatpush3.msra.mxu0 %v23_v1  ;;  %259 = vmatprep.subr.mxu1 %v301_v0  ;;  %v119_v5 = vld [vmem:[%s410_s3 + $0x68] sm:$0xff]  ;;  %v117_v7 = vld [vmem:[%s410_s3 + $0x58] sm:$0xff]  ;;  %v200_v25 = vand.u32 127, %v199_v24 }
   0x3   :  { %257 = vmatmul.mubr.msk.f32.vlgmr.msra.gmra.mxu0 %vm31_vm0, %v22_v2  ;;  %260 = vmatpush3.msra.mxu1 %v121_v3  ;;  %v118_v6 = vld [vmem:[%s410_s3 + $0x60] sm:$0xff]  ;;  %v116_v8 = vld [vmem:[%s410_s3 + $0x50] sm:$0xff]  ;;  %v115_v9 = vld [vmem:[%s410_s3 + $0x48] sm:$0xff] }
   0x4   :  { %261 = vmatprep.subr.mxu1 %v301_v0  ;;  %291 = vmatprep.mubr.msk.f32.mxu1 %vm302_vm1, %v301_v0  ;;  %v114_v10 = vld [vmem:[%s410_s3 + $0x40] sm:$0xff]  ;;  %v113_v11 = vld [vmem:[%s410_s3 + $0x38] sm:$0xff]  ;;  %v112_v12 = vld [vmem:[%s410_s3 + $0x30] sm:$0xff]  ;;  %vm201_vm2 = vcmp.lt.s32.totalorder %v200_v25, 4 }
   0x5   :  { %262 = vmatpush3.msra.mxu1 %v120_v4  ;;  %v111_v13 = vld [vmem:[%s410_s3 + $0x28] sm:$0xff]  ;;  %v110_v14 = vld [vmem:[%s410_s3 + $0x20] sm:$0xff]  ;;  %v109_v15 = vld [vmem:[%s410_s3 + $0x18] sm:$0xff] }
   0x6   :  { %263 = vmatprep.subr.mxu1 %v301_v0  ;;  %v108_v16 = vld [vmem:[%s410_s3 + $0x10] sm:$0xff]  ;;  %v107_v17 = vld [vmem:[%s410_s3 + $0x8] sm:$0xff]  ;;  %v106_v18 = vld [vmem:[%s410_s3] sm:$0xff]  ;;  %s303_s3 = smov 124  }
   0x7   :  { %264 = vmatpush3.msra.mxu1 %v119_v5  ;;  %v232_v19 = vld [vmem:[%s411_s2] ss:$0 sm:$0xff] }
   0x8   :  { %265 = vmatprep.subr.mxu1 %v301_v0  ;;  %v234_v26 = vld [vmem:[%s412_s4] ss:$0 sm:$0xff] }
   0x9   :  { %266 = vmatpush3.msra.mxu1 %v118_v6 }
   0xa   :  { %267 = vmatprep.subr.mxu1 %v301_v0 }
   0xb   :  { %268 = vmatpush3.msra.mxu1 %v117_v7 }
   0xc   :  { %269 = vmatprep.subr.mxu1 %v301_v0 }
   0xd   :  { %270 = vmatpush3.msra.mxu1 %v116_v8 }
   0xe   :  { %271 = vmatprep.subr.mxu1 %v301_v0 }
   0xf   :  { %272 = vmatpush3.msra.mxu1 %v115_v9 }
  0x10   :  { %273 = vmatprep.subr.mxu1 %v301_v0 }
  0x11   :  { %274 = vmatpush3.msra.mxu1 %v114_v10 }
  0x12   :  { %275 = vmatprep.subr.mxu1 %v301_v0 }
  0x13   :  { %276 = vmatpush3.msra.mxu1 %v113_v11 }
  0x14   :  { %277 = vmatprep.subr.mxu1 %v301_v0 }
  0x15   :  { %278 = vmatpush3.msra.mxu1 %v112_v12 }
  0x16   :  { %279 = vmatprep.subr.mxu1 %v301_v0 }
  0x17   :  { %280 = vmatpush3.msra.mxu1 %v111_v13 }
  0x18   :  { %281 = vmatprep.subr.mxu1 %v301_v0 }
  0x19   :  { %282 = vmatpush3.msra.mxu1 %v110_v14 }
  0x1a   :  { %283 = vmatprep.subr.mxu1 %v301_v0 }
  0x1b   :  { %284 = vmatpush3.msra.mxu1 %v109_v15 }
  0x1c   :  { %285 = vmatprep.subr.mxu1 %v301_v0 }
  0x1d   :  { %286 = vmatpush3.msra.mxu1 %v108_v16 }
  0x1e   :  { %287 = vmatprep.subr.mxu1 %v301_v0 }
  0x1f   :  { %288 = vmatpush3.msra.mxu1 %v107_v17 }
  0x20   :  { %289 = vmatprep.subr.mxu1 %v301_v0 }
  0x21   :  { %290 = vmatpush3.msra.mxu1 %v106_v18 }
  0xc3   :  { %v101_v20 = vpop.f32.mrf.mxu0 }
  0xc4   :  { %v102_v21 = vadd.f32 %v232_v19, %v101_v20 }
  0xc5   :  { %v258_v22 = vpop.f32.mrf.mxu0 }
  0xc6   :  { %v105_v23 = vmax.f32 %v102_v21, 0.0 }
  0xc8   :  { %292 = vmatmul.mubr.f32.vlgmr.msra.gmra.mxu1 %v105_v23 }
 0x188   :  { %v195_v27 = vpop.f32.mrf.mxu1 }
 0x189   :  { %v196_v28 = vadd.f32 %v234_v26, %v195_v27 }
 0x18a   :  { %v293_v29 = vpop.f32.mrf.mxu1 }
 0x18b   :  { %219 = vrot.lane.b32.xlu1 %v196_v28, %s303_s3  ;;  %v204_v30 = vsel %vm201_vm2, %v196_v28, -inf }
 0x18c   :  { %v205_v31 = vsel %vm31_vm0, %v204_v30, -inf }
 0x18d   :  { %206 = vmax.xlane.f32.xlu0 %v205_v31 }
 0x1fd   :  { %v220_v32 = vpop.permute.xlu1 %219 }
 0x1fe   :  { %223 = vst.msk [vmem:[%s413_s6] sm:$0xff] %vm222_vm3, %v220_v32 }
 0x216   :  { %v207_v33 = vpop.xlane.xlu0 %206 }
 0x217   :  { %v208_v34 = vsub.f32 %v204_v30, %v207_v33 }
 0x219   :  { %v209_v35 = vmul.f32 1.442695, %v208_v34 }
 0x21b   :  { %297 = vpow2.f32 %v209_v35 }
 0x228   :  { %v298_v36 = vpop.eup %297 }
 0x229   :  { %v211_v37 = vsel %vm31_vm0, %v298_v36, 0.0 }
 0x22a   :  { %212 = vadd.xlane.f32.xlu0 %v211_v37 }
 0x2b3   :  { %v213_v38 = vpop.xlane.xlu0 %212 }
 0x2b4   :  { %299 = vrcp.f32 %v213_v38 }
 0x2c1   :  { %v300_v39 = vpop.eup %299 }
 0x2c2   :  { %v215_v40 = vmul.f32 %v300_v39, %v298_v36 }
 0x2c4   :  { %217 = vst.msk [vmem:[%s414_s5] sm:$0xff] %vm216_vm4, %v215_v40 }

</bundles_post_ra>
